<compile_context>
chip_gen: v7x
topology: tpu7x:2x2x1
jax: 0.10.0
libtpu: 0.0.40
codegen_flags: <defaults>
</compile_context>

<pallas_src>
import functools

import jax
import jax.numpy as jnp
from jax import lax
from jax.experimental import pallas as pl
from jax.experimental.pallas import tpu as pltpu


def _round_up(v, m):
    return ((v + m - 1) // m) * m


def _comm_kernel(x_ref, s_ref, m_ref, w1_ref, b1_ref, w2_ref, b2_ref, out_ref,
                 *, dx, ds):
    """Fused forward for both MLP branches.

    x_ref : [bB, dx]    current agent hidden state
    s_ref : [bB, ds]    flattened predicted states of the other agents
    m_ref : [bB, dm]    social memory
    w1    : [D, 2H]     stacked first-layer weight (D = dx + ds + dm)
    b1    : [1, 2H]     stacked first-layer bias (f32)
    w2    : [2H, C]     block-diagonal stacked second-layer weight
    b2    : [1, C]      stacked second-layer bias (f32)
    out   : [bB, C]     cat([action_intent, tanh(env_info)], axis=1)
    """
    cd = w1_ref.dtype  # compute dtype (bf16 fast path or f32 parity path)

    # Layer 1 (both branches at once): concat([x, s, m]) @ W1 == sum of dots
    # against static row-slabs of the stacked W1.  dx and dx+ds are multiples
    # of 8, so the slab views are sublane-aligned (zero-cost static views).
    h = (jnp.dot(x_ref[...], w1_ref[0:dx, :], preferred_element_type=jnp.float32)
         + jnp.dot(s_ref[...], w1_ref[dx:dx + ds, :], preferred_element_type=jnp.float32)
         + jnp.dot(m_ref[...], w1_ref[dx + ds:, :], preferred_element_type=jnp.float32)
         + b1_ref[...])
    h = jnp.maximum(h, 0.0).astype(cd)  # ReLU; back to compute dtype -> native-MXU layer 2

    # Layer 2 (both branches at once): block-diagonal W2 gives
    #   y[:, :C2] = h_a @ w2a + b2a   (action_intent)
    #   y[:, C2:] = h_e @ w2e + b2e   (env_info, pre-tanh)
    y = jnp.dot(h, w2_ref[...], preferred_element_type=jnp.float32) + b2_ref[...]

    # Tanh only on the env_info half, selected with a lane mask — single
    # full-tile store, no concat, no XLU shuffle, no extra VMEM temp.
    C = out_ref.shape[-1]
    lane = lax.broadcasted_iota(jnp.int32, y.shape, dimension=1)
    out_ref[...] = jnp.where(lane < C // 2, y, jnp.tanh(y)).astype(out_ref.dtype)


def fuse_params(params, input_dim, hidden_dim, n_agents,
                compute_dtype=jnp.bfloat16):
    """One-time parameter prep: stack / block-diagonalize the branch weights."""
    (w1a, b1a, w2a, b2a, w1e, b1e, w2e, b2e) = params
    H = w1a.shape[1]
    C2a, C2e = w2a.shape[1], w2e.shape[1]
    assert C2a == C2e, "comm_dim must be even (equal action/env halves)"
    C = C2a + C2e
    D = w1a.shape[0]
    assert D == input_dim + hidden_dim * (n_agents - 1) + hidden_dim

    # Stacked first layer: [D, 2H].
    w1 = jnp.concatenate([w1a, w1e], axis=1).astype(compute_dtype)
    b1 = jnp.concatenate([b1a, b1e], axis=1).astype(jnp.float32)   # [1, 2H]

    # Block-diagonal second layer: [2H, C].
    # NOTE: this doubles W2 MACs/bytes vs two separate dots; negligible at
    # H=32/C=16 (the MXU pads anyway) — revisit if branch widths grow.
    w2 = jnp.zeros((2 * H, C), jnp.float32)
    w2 = w2.at[:H, :C2a].set(w2a).at[H:, C2a:].set(w2e)
    w2 = w2.astype(compute_dtype)
    b2 = jnp.concatenate([b2a, b2e], axis=1).astype(jnp.float32)   # [1, C]
    return (w1, b1, w2, b2)


def communication_strategy_forward(x, predicted_states, social_memory, fused_params):
    """Wrapper: only a cheap reshape + dtype cast here; all compute in the kernel."""
    B = x.shape[0]
    flat_states = predicted_states.reshape(B, -1)
    (w1, b1, w2, b2) = fused_params
    cd = w1.dtype

    x = x.astype(cd)
    flat_states = flat_states.astype(cd)
    social_memory = social_memory.astype(cd)

    dx = x.shape[1]
    ds = flat_states.shape[1]
    dm = social_memory.shape[1]
    D, H2 = w1.shape           # D = dx+ds+dm, H2 = 2H
    C = w2.shape[1]
    assert D == dx + ds + dm

    # Batch tile: one step for small/medium B; for large B split into >=2
    # parallel steps (both TensorCores on v7x) with 8-aligned blocks up to 4096
    # rows (a few MiB double-buffered — far under VMEM on any generation).
    if B <= 1024:
        block_b = B
    else:
        block_b = min(4096, _round_up(pl.cdiv(B, 2), 8))
    grid = (pl.cdiv(B, block_b),)

    def build(weight_pipeline_mode):
        wkw = {} if weight_pipeline_mode is None else dict(pipeline_mode=weight_pipeline_mode)
        return pl.pallas_call(
            functools.partial(_comm_kernel, dx=dx, ds=ds),
            out_shape=jax.ShapeDtypeStruct((B, C), jnp.float32),
            grid_spec=pltpu.PrefetchScalarGridSpec(
                num_scalar_prefetch=0,
                grid=grid,
                in_specs=[
                    # activations: tiled along batch
                    pl.BlockSpec((block_b, dx), lambda i: (i, 0)),
                    pl.BlockSpec((block_b, ds), lambda i: (i, 0)),
                    pl.BlockSpec((block_b, dm), lambda i: (i, 0)),
                    # weights/biases: full, resident (constant index_map)
                    pl.BlockSpec((D, H2), lambda i: (0, 0), **wkw),
                    pl.BlockSpec((1, H2), lambda i: (0, 0), **wkw),
                    pl.BlockSpec((H2, C), lambda i: (0, 0), **wkw),
                    pl.BlockSpec((1, C), lambda i: (0, 0), **wkw),
                ],
                out_specs=pl.BlockSpec((block_b, C), lambda i: (i, 0)),
            ),
            compiler_params=pltpu.CompilerParams(
                dimension_semantics=("parallel",)),   # shard batch across TCs (v7x)
        )

    args = (x, flat_states, social_memory, w1, b1, w2, b2)
    try:
        # Constant-index weights: single-buffer (no wasted second copy / rotation).
        return build(pl.Buffered(1))(*args)
    except Exception:
        # Fallback if this jax build rejects Buffered(1) on constant specs.
        return build(None)(*args)


def init_params(key, input_dim, hidden_dim, comm_dim, n_agents):
    """Deterministic synthetic parameters (PyTorch-default-like uniform init)."""
    D = input_dim + hidden_dim * (n_agents - 1) + hidden_dim
    H = hidden_dim
    C2 = comm_dim // 2
    ks = jax.random.split(key, 8)

    def uni(k, shape, fan_in):
        bound = 1.0 / jnp.sqrt(fan_in)
        return jax.random.uniform(k, shape, jnp.float32, -bound, bound)

    # weights stored [in, out]; biases stored [1, out] (2-D for TPU layout)
    w1a = uni(ks[0], (D, H), D)
    b1a = uni(ks[1], (1, H), D)
    w2a = uni(ks[2], (H, C2), H)
    b2a = uni(ks[3], (1, C2), H)
    w1e = uni(ks[4], (D, H), D)
    b1e = uni(ks[5], (1, H), D)
    w2e = uni(ks[6], (H, C2), H)
    b2e = uni(ks[7], (1, C2), H)
    return (w1a, b1a, w2a, b2a, w1e, b1e, w2e, b2e)


def reference_forward(x, predicted_states, social_memory, params):
    """Pure-JAX f32 reference (unfused, mirrors the PyTorch module)."""
    (w1a, b1a, w2a, b2a, w1e, b1e, w2e, b2e) = params
    flat_states = predicted_states.reshape(x.shape[0], -1)
    c = jnp.concatenate([x, flat_states, social_memory], axis=1)
    a = jnp.maximum(c @ w1a + b1a, 0.0) @ w2a + b2a
    e = jnp.tanh(jnp.maximum(c @ w1e + b1e, 0.0) @ w2e + b2e)
    return jnp.concatenate([a, e], axis=1)


if __name__ == "__main__":
    # small shapes consistent with the module
    batch = 2
    input_dim = 32      # dim of x
    hidden_dim = 32     # dim of each predicted state / social_memory
    comm_dim = 16
    n_agents = 3

    key = jax.random.PRNGKey(0)
    kx, kp, km, kparam, kx2, kp2, km2 = jax.random.split(key, 7)

    x = jax.random.normal(kx, (batch, input_dim), jnp.float32)
    predicted_states = jax.random.normal(kp, (batch, n_agents - 1, hidden_dim), jnp.float32)
    social_memory = jax.random.normal(km, (batch, hidden_dim), jnp.float32)

    params = init_params(kparam, input_dim, hidden_dim, comm_dim, n_agents)
    ref = reference_forward(x, predicted_states, social_memory, params)

    # 1) exact-parity path (f32 compute) at the toy batch.
    fused_f32 = fuse_params(params, input_dim, hidden_dim, n_agents,
                            compute_dtype=jnp.float32)
    out_f32 = jax.block_until_ready(
        communication_strategy_forward(x, predicted_states, social_memory, fused_f32))
    assert out_f32.shape == (batch, comm_dim)
    assert jnp.allclose(out_f32, ref, atol=1e-5, rtol=1e-5)

    # 2) fast path (bf16 activations/weights, f32 accumulation) at the toy batch.
    fused_bf16 = fuse_params(params, input_dim, hidden_dim, n_agents,
                             compute_dtype=jnp.bfloat16)
    out_bf16 = jax.block_until_ready(
        communication_strategy_forward(x, predicted_states, social_memory, fused_bf16))
    assert out_bf16.shape == (batch, comm_dim)
    assert jnp.allclose(out_bf16, ref, atol=5e-2, rtol=5e-2)

    # 3) fast path on a larger batch to exercise the 2-step (megacore) grid.
    B2 = 1536
    x2 = jax.random.normal(kx2, (B2, input_dim), jnp.float32)
    p2 = jax.random.normal(kp2, (B2, n_agents - 1, hidden_dim), jnp.float32)
    m2 = jax.random.normal(km2, (B2, hidden_dim), jnp.float32)
    ref2 = reference_forward(x2, p2, m2, params)
    out2 = jax.block_until_ready(
        communication_strategy_forward(x2, p2, m2, fused_bf16))
    assert out2.shape == (B2, comm_dim)
    assert jnp.allclose(out2, ref2, atol=5e-2, rtol=5e-2)

    print("KERNEL_OK")
</pallas_src>

<mosaic_0001>
module attributes {stable_mosaic.version = 11 : i64} {
  func.func @_comm_kernel(%arg0: i32, %arg1: memref<2x32xf32, #tpu.memory_space<vmem>>, %arg2: memref<2x64xf32, #tpu.memory_space<vmem>>, %arg3: memref<2x32xf32, #tpu.memory_space<vmem>>, %arg4: memref<128x64xf32, #tpu.memory_space<vmem>>, %arg5: memref<1x64xf32, #tpu.memory_space<vmem>>, %arg6: memref<64x16xf32, #tpu.memory_space<vmem>>, %arg7: memref<1x16xf32, #tpu.memory_space<vmem>>, %arg8: memref<2x16xf32, #tpu.memory_space<vmem>>) attributes {dimension_semantics = [#tpu.dimension_semantics<parallel>], iteration_bounds = array<i64: 1>, scalar_prefetch = 0 : i64, scratch_operands = 0 : i64, tpu.core_type = #tpu.core_type<tc>, window_params = [{transform_indices = @transform_0, window_bounds = array<i64: 2, 32>}, {transform_indices = @transform_1, window_bounds = array<i64: 2, 64>}, {transform_indices = @transform_2, window_bounds = array<i64: 2, 32>}, {pipeline_mode = #tpu.pipeline_mode<synchronous>, transform_indices = @transform_3, window_bounds = array<i64: 128, 64>}, {pipeline_mode = #tpu.pipeline_mode<synchronous>, transform_indices = @transform_4, window_bounds = array<i64: 1, 64>}, {pipeline_mode = #tpu.pipeline_mode<synchronous>, transform_indices = @transform_5, window_bounds = array<i64: 64, 16>}, {pipeline_mode = #tpu.pipeline_mode<synchronous>, transform_indices = @transform_6, window_bounds = array<i64: 1, 16>}, {transform_indices = @transform_7, window_bounds = array<i64: 2, 16>}]} {
    %c0 = arith.constant 0 : index
    %c0_0 = arith.constant 0 : index
    %0 = vector.load %arg1[%c0, %c0_0] : memref<2x32xf32, #tpu.memory_space<vmem>>, vector<2x32xf32>
    %c0_1 = arith.constant 0 : index
    %c0_2 = arith.constant 0 : index
    %1 = vector.load %arg4[%c0_1, %c0_2] : memref<128x64xf32, #tpu.memory_space<vmem>>, vector<32x64xf32>
    %cst = arith.constant dense<0.000000e+00> : vector<2x64xf32>
    %2 = tpu.matmul %0, %1, %cst {dimension_numbers = #tpu.dot_dimension_numbers<[1], [0], [0], [1], [0, 0, 1, 1], [], []>} : vector<2x32xf32>, vector<32x64xf32>, vector<2x64xf32> -> vector<2x64xf32>
    %c0_3 = arith.constant 0 : index
    %c0_4 = arith.constant 0 : index
    %3 = vector.load %arg2[%c0_3, %c0_4] : memref<2x64xf32, #tpu.memory_space<vmem>>, vector<2x64xf32>
    %c32 = arith.constant 32 : index
    %c0_5 = arith.constant 0 : index
    %4 = vector.load %arg4[%c32, %c0_5] : memref<128x64xf32, #tpu.memory_space<vmem>>, vector<64x64xf32>
    %cst_6 = arith.constant dense<0.000000e+00> : vector<2x64xf32>
    %5 = tpu.matmul %3, %4, %cst_6 {dimension_numbers = #tpu.dot_dimension_numbers<[1], [0], [0], [1], [0, 0, 1, 1], [], []>} : vector<2x64xf32>, vector<64x64xf32>, vector<2x64xf32> -> vector<2x64xf32>
    %6 = arith.addf %2, %5 : vector<2x64xf32>
    %c0_7 = arith.constant 0 : index
    %c0_8 = arith.constant 0 : index
    %7 = vector.load %arg3[%c0_7, %c0_8] : memref<2x32xf32, #tpu.memory_space<vmem>>, vector<2x32xf32>
    %c96 = arith.constant 96 : index
    %c0_9 = arith.constant 0 : index
    %8 = vector.load %arg4[%c96, %c0_9] : memref<128x64xf32, #tpu.memory_space<vmem>>, vector<32x64xf32>
    %cst_10 = arith.constant dense<0.000000e+00> : vector<2x64xf32>
    %9 = tpu.matmul %7, %8, %cst_10 {dimension_numbers = #tpu.dot_dimension_numbers<[1], [0], [0], [1], [0, 0, 1, 1], [], []>} : vector<2x32xf32>, vector<32x64xf32>, vector<2x64xf32> -> vector<2x64xf32>
    %10 = arith.addf %6, %9 : vector<2x64xf32>
    %c0_11 = arith.constant 0 : index
    %c0_12 = arith.constant 0 : index
    %11 = vector.load %arg5[%c0_11, %c0_12] : memref<1x64xf32, #tpu.memory_space<vmem>>, vector<1x64xf32>
    %12 = vector.broadcast %11 : vector<1x64xf32> to vector<2x64xf32>
    %13 = arith.addf %10, %12 : vector<2x64xf32>
    %cst_13 = arith.constant 0.000000e+00 : f32
    %14 = vector.broadcast %cst_13 : f32 to vector<2x64xf32>
    %15 = arith.maximumf %13, %14 : vector<2x64xf32>
    %c0_14 = arith.constant 0 : index
    %c0_15 = arith.constant 0 : index
    %16 = vector.load %arg6[%c0_14, %c0_15] : memref<64x16xf32, #tpu.memory_space<vmem>>, vector<64x16xf32>
    %cst_16 = arith.constant dense<0.000000e+00> : vector<2x16xf32>
    %17 = tpu.matmul %15, %16, %cst_16 {dimension_numbers = #tpu.dot_dimension_numbers<[1], [0], [0], [1], [0, 0, 1, 1], [], []>} : vector<2x64xf32>, vector<64x16xf32>, vector<2x16xf32> -> vector<2x16xf32>
    %c0_17 = arith.constant 0 : index
    %c0_18 = arith.constant 0 : index
    %18 = vector.load %arg7[%c0_17, %c0_18] : memref<1x16xf32, #tpu.memory_space<vmem>>, vector<1x16xf32>
    %19 = vector.broadcast %18 : vector<1x16xf32> to vector<2x16xf32>
    %20 = arith.addf %17, %19 : vector<2x16xf32>
    %21 = tpu.iota {dimensions = array<i32: 1>} : vector<2x16xi32>
    %c8_i32 = arith.constant 8 : i32
    %22 = vector.broadcast %c8_i32 : i32 to vector<2x16xi32>
    %23 = arith.cmpi slt, %21, %22 : vector<2x16xi32>
    %24 = math.tanh %20 : vector<2x16xf32>
    %25 = arith.select %23, %20, %24 : vector<2x16xi1>, vector<2x16xf32>
    %c0_19 = arith.constant 0 : index
    %c0_20 = arith.constant 0 : index
    %26 = vector.load %arg8[%c0_19, %c0_20] : memref<2x16xf32, #tpu.memory_space<vmem>>, vector<2x16xf32>
    tpu.vector_store %arg8[%c0_19, %c0_20], %25 {strides = array<i32>} : memref<2x16xf32, #tpu.memory_space<vmem>>, vector<2x16xf32>,
    return
  }
  func.func @transform_0(%arg0: i32) -> (i32, i32) {
    %c0_i32 = arith.constant 0 : i32
    %c0_i32_0 = arith.constant 0 : i32
    return %arg0, %c0_i32 : i32, i32
  }
  func.func @transform_1(%arg0: i32) -> (i32, i32) {
    %c0_i32 = arith.constant 0 : i32
    %c0_i32_0 = arith.constant 0 : i32
    return %arg0, %c0_i32 : i32, i32
  }
  func.func @transform_2(%arg0: i32) -> (i32, i32) {
    %c0_i32 = arith.constant 0 : i32
    %c0_i32_0 = arith.constant 0 : i32
    return %arg0, %c0_i32 : i32, i32
  }
  func.func @transform_3(%arg0: i32) -> (i32, i32) {
    %c0_i32 = arith.constant 0 : i32
    %c0_i32_0 = arith.constant 0 : i32
    %c0_i32_1 = arith.constant 0 : i32
    return %c0_i32, %c0_i32_0 : i32, i32
  }
  func.func @transform_4(%arg0: i32) -> (i32, i32) {
    %c0_i32 = arith.constant 0 : i32
    %c0_i32_0 = arith.constant 0 : i32
    %c0_i32_1 = arith.constant 0 : i32
    return %c0_i32, %c0_i32_0 : i32, i32
  }
  func.func @transform_5(%arg0: i32) -> (i32, i32) {
    %c0_i32 = arith.constant 0 : i32
    %c0_i32_0 = arith.constant 0 : i32
    %c0_i32_1 = arith.constant 0 : i32
    return %c0_i32, %c0_i32_0 : i32, i32
  }
  func.func @transform_6(%arg0: i32) -> (i32, i32) {
    %c0_i32 = arith.constant 0 : i32
    %c0_i32_0 = arith.constant 0 : i32
    %c0_i32_1 = arith.constant 0 : i32
    return %c0_i32, %c0_i32_0 : i32, i32
  }
  func.func @transform_7(%arg0: i32) -> (i32, i32) {
    %c0_i32 = arith.constant 0 : i32
    %c0_i32_0 = arith.constant 0 : i32
    return %arg0, %c0_i32 : i32, i32
  }
}

module attributes {stable_mosaic.version = 11 : i64} {
  func.func @_comm_kernel(%arg0: i32, %arg1: memref<2x32xf32, #tpu.memory_space<vmem>>, %arg2: memref<2x64xf32, #tpu.memory_space<vmem>>, %arg3: memref<2x32xf32, #tpu.memory_space<vmem>>, %arg4: memref<128x64xf32, #tpu.memory_space<vmem>>, %arg5: memref<1x64xf32, #tpu.memory_space<vmem>>, %arg6: memref<64x16xf32, #tpu.memory_space<vmem>>, %arg7: memref<1x16xf32, #tpu.memory_space<vmem>>, %arg8: memref<2x16xf32, #tpu.memory_space<vmem>>) attributes {dimension_semantics = [#tpu.dimension_semantics<parallel>], iteration_bounds = array<i64: 1>, scalar_prefetch = 0 : i64, scratch_operands = 0 : i64, tpu.core_type = #tpu.core_type<tc>, window_params = [{transform_indices = @transform_0, window_bounds = array<i64: 2, 32>}, {transform_indices = @transform_1, window_bounds = array<i64: 2, 64>}, {transform_indices = @transform_2, window_bounds = array<i64: 2, 32>}, {pipeline_mode = #tpu.pipeline_mode<synchronous>, transform_indices = @transform_3, window_bounds = array<i64: 128, 64>}, {pipeline_mode = #tpu.pipeline_mode<synchronous>, transform_indices = @transform_4, window_bounds = array<i64: 1, 64>}, {pipeline_mode = #tpu.pipeline_mode<synchronous>, transform_indices = @transform_5, window_bounds = array<i64: 64, 16>}, {pipeline_mode = #tpu.pipeline_mode<synchronous>, transform_indices = @transform_6, window_bounds = array<i64: 1, 16>}, {transform_indices = @transform_7, window_bounds = array<i64: 2, 16>}]} {
    %c0 = arith.constant 0 : index
    %c0_0 = arith.constant 0 : index
    %0 = vector.load %arg1[%c0, %c0_0] : memref<2x32xf32, #tpu.memory_space<vmem>>, vector<2x32xf32>
    %c0_1 = arith.constant 0 : index
    %c0_2 = arith.constant 0 : index
    %1 = vector.load %arg4[%c0_1, %c0_2] : memref<128x64xf32, #tpu.memory_space<vmem>>, vector<32x64xf32>
    %cst = arith.constant dense<0.000000e+00> : vector<2x64xf32>
    %2 = tpu.matmul %0, %1, %cst {dimension_numbers = #tpu.dot_dimension_numbers<[1], [0], [0], [1], [0, 0, 1, 1], [], []>} : vector<2x32xf32>, vector<32x64xf32>, vector<2x64xf32> -> vector<2x64xf32>
    %c0_3 = arith.constant 0 : index
    %c0_4 = arith.constant 0 : index
    %3 = vector.load %arg2[%c0_3, %c0_4] : memref<2x64xf32, #tpu.memory_space<vmem>>, vector<2x64xf32>
    %c32 = arith.constant 32 : index
    %c0_5 = arith.constant 0 : index
    %4 = vector.load %arg4[%c32, %c0_5] : memref<128x64xf32, #tpu.memory_space<vmem>>, vector<64x64xf32>
    %cst_6 = arith.constant dense<0.000000e+00> : vector<2x64xf32>
    %5 = tpu.matmul %3, %4, %cst_6 {dimension_numbers = #tpu.dot_dimension_numbers<[1], [0], [0], [1], [0, 0, 1, 1], [], []>} : vector<2x64xf32>, vector<64x64xf32>, vector<2x64xf32> -> vector<2x64xf32>
    %6 = arith.addf %2, %5 : vector<2x64xf32>
    %c0_7 = arith.constant 0 : index
    %c0_8 = arith.constant 0 : index
    %7 = vector.load %arg3[%c0_7, %c0_8] : memref<2x32xf32, #tpu.memory_space<vmem>>, vector<2x32xf32>
    %c96 = arith.constant 96 : index
    %c0_9 = arith.constant 0 : index
    %8 = vector.load %arg4[%c96, %c0_9] : memref<128x64xf32, #tpu.memory_space<vmem>>, vector<32x64xf32>
    %cst_10 = arith.constant dense<0.000000e+00> : vector<2x64xf32>
    %9 = tpu.matmul %7, %8, %cst_10 {dimension_numbers = #tpu.dot_dimension_numbers<[1], [0], [0], [1], [0, 0, 1, 1], [], []>} : vector<2x32xf32>, vector<32x64xf32>, vector<2x64xf32> -> vector<2x64xf32>
    %10 = arith.addf %6, %9 : vector<2x64xf32>
    %c0_11 = arith.constant 0 : index
    %c0_12 = arith.constant 0 : index
    %11 = vector.load %arg5[%c0_11, %c0_12] : memref<1x64xf32, #tpu.memory_space<vmem>>, vector<1x64xf32>
    %12 = vector.broadcast %11 : vector<1x64xf32> to vector<2x64xf32>
    %13 = arith.addf %10, %12 : vector<2x64xf32>
    %cst_13 = arith.constant 0.000000e+00 : f32
    %14 = vector.broadcast %cst_13 : f32 to vector<2x64xf32>
    %15 = arith.maximumf %13, %14 : vector<2x64xf32>
    %c0_14 = arith.constant 0 : index
    %c0_15 = arith.constant 0 : index
    %16 = vector.load %arg6[%c0_14, %c0_15] : memref<64x16xf32, #tpu.memory_space<vmem>>, vector<64x16xf32>
    %cst_16 = arith.constant dense<0.000000e+00> : vector<2x16xf32>
    %17 = tpu.matmul %15, %16, %cst_16 {dimension_numbers = #tpu.dot_dimension_numbers<[1], [0], [0], [1], [0, 0, 1, 1], [], []>} : vector<2x64xf32>, vector<64x16xf32>, vector<2x16xf32> -> vector<2x16xf32>
    %c0_17 = arith.constant 0 : index
    %c0_18 = arith.constant 0 : index
    %18 = vector.load %arg7[%c0_17, %c0_18] : memref<1x16xf32, #tpu.memory_space<vmem>>, vector<1x16xf32>
    %19 = vector.broadcast %18 : vector<1x16xf32> to vector<2x16xf32>
    %20 = arith.addf %17, %19 : vector<2x16xf32>
    %21 = tpu.iota {dimensions = array<i32: 1>} : vector<2x16xi32>
    %c8_i32 = arith.constant 8 : i32
    %22 = vector.broadcast %c8_i32 : i32 to vector<2x16xi32>
    %23 = arith.cmpi slt, %21, %22 : vector<2x16xi32>
    %24 = math.tanh %20 : vector<2x16xf32>
    %25 = arith.select %23, %20, %24 : vector<2x16xi1>, vector<2x16xf32>
    %c0_19 = arith.constant 0 : index
    %c0_20 = arith.constant 0 : index
    %26 = vector.load %arg8[%c0_19, %c0_20] : memref<2x16xf32, #tpu.memory_space<vmem>>, vector<2x16xf32>
    tpu.vector_store %arg8[%c0_19, %c0_20], %25 {strides = array<i32>} : memref<2x16xf32, #tpu.memory_space<vmem>>, vector<2x16xf32>,
    return
  }
  func.func @transform_0(%arg0: i32) -> (i32, i32) {
    %c0_i32 = arith.constant 0 : i32
    %c0_i32_0 = arith.constant 0 : i32
    return %arg0, %c0_i32 : i32, i32
  }
  func.func @transform_1(%arg0: i32) -> (i32, i32) {
    %c0_i32 = arith.constant 0 : i32
    %c0_i32_0 = arith.constant 0 : i32
    return %arg0, %c0_i32 : i32, i32
  }
  func.func @transform_2(%arg0: i32) -> (i32, i32) {
    %c0_i32 = arith.constant 0 : i32
    %c0_i32_0 = arith.constant 0 : i32
    return %arg0, %c0_i32 : i32, i32
  }
  func.func @transform_3(%arg0: i32) -> (i32, i32) {
    %c0_i32 = arith.constant 0 : i32
    %c0_i32_0 = arith.constant 0 : i32
    %c0_i32_1 = arith.constant 0 : i32
    return %c0_i32, %c0_i32_0 : i32, i32
  }
  func.func @transform_4(%arg0: i32) -> (i32, i32) {
    %c0_i32 = arith.constant 0 : i32
    %c0_i32_0 = arith.constant 0 : i32
    %c0_i32_1 = arith.constant 0 : i32
    return %c0_i32, %c0_i32_0 : i32, i32
  }
  func.func @transform_5(%arg0: i32) -> (i32, i32) {
    %c0_i32 = arith.constant 0 : i32
    %c0_i32_0 = arith.constant 0 : i32
    %c0_i32_1 = arith.constant 0 : i32
    return %c0_i32, %c0_i32_0 : i32, i32
  }
  func.func @transform_6(%arg0: i32) -> (i32, i32) {
    %c0_i32 = arith.constant 0 : i32
    %c0_i32_0 = arith.constant 0 : i32
    %c0_i32_1 = arith.constant 0 : i32
    return %c0_i32, %c0_i32_0 : i32, i32
  }
  func.func @transform_7(%arg0: i32) -> (i32, i32) {
    %c0_i32 = arith.constant 0 : i32
    %c0_i32_0 = arith.constant 0 : i32
    return %arg0, %c0_i32 : i32, i32
  }
}

</mosaic_0001>

<bundles_post_ra>
// kernel: tpu_custom_call.1
= control target key start
LH: loop header
LB: loop body
LE: loop exit
PB: predicated region body
PF: predicated region fallthrough
CT: control target
= control target key end

     0   :  { %v546_v3 = vmov 0.0|0.0   ;;  %vm547_vm0 = vmmov 0   ;;  %v548_v11 = vmov 0.0   ;;  %s709_s0 = inlined_call_operand.vmem [shape: f32[2,32], index: 0, kind: input, shape index: {}]   ;;  %s710_s1 = inlined_call_operand.vmem [shape: f32[2,64], index: 1, kind: input, shape index: {}]   ;;  %s711_s2 = inlined_call_operand.vmem [shape: f32[2,32], index: 2, kind: input, shape index: {}]   ;;  %s712_s3 = inlined_call_operand.vmem [shape: f32[128,64], index: 3, kind: input, shape index: {}]   ;;  %s713_s4 = inlined_call_operand.vmem [shape: f32[1,64], index: 4, kind: input, shape index: {}]   ;;  %s714_s5 = inlined_call_operand.vmem [shape: f32[64,16], index: 5, kind: input, shape index: {}]   ;;  %s715_s6 = inlined_call_operand.vmem [shape: f32[1,16], index: 6, kind: input, shape index: {}]   ;;  %s716_s7 = inlined_call_operand.hbm [shape: f32[2,16], index: 7, kind: output, shape index: {}]  }
   0x1   :  { %v33_v0 = vld [vmem:[%s712_s3 + $0x20] sm:$0xff]  ;;  %v34_v1 = vld [vmem:[%s712_s3 + $0x28] sm:$0xff]  ;;  %480 = vmatprep.subr.bf16.mxu0 %v546_v3  ;;  %492 = vmatprep.subr.bf16.mxu1 %v546_v3  ;;  %v35_v6 = vld [vmem:[%s712_s3 + $0x30] sm:$0xff] }
   0x2   :  { %v28_v2 = vld [vmem:[%s712_s3] sm:$0xff]  ;;  %v481_v4 = vpack.c.bf16 %v34_v1, %v33_v0  ;;  %v29_v5 = vld [vmem:[%s712_s3 + $0x8] sm:$0xff]  ;;  %v36_v7 = vld [vmem:[%s712_s3 + $0x38] sm:$0xff]  ;;  %447 = vmatprep.mubr.msk.f32.mxu1 %vm547_vm0, %v548_v11  ;;  %436 = vmatprep.mubr.msk.f32.mxu0 %vm547_vm0, %v548_v11 }
   0x3   :  { %v493_v8 = vpack.c.bf16 %v29_v5, %v28_v2  ;;  %v30_v9 = vld [vmem:[%s712_s3 + $0x10] sm:$0xff]  ;;  %v31_v10 = vld [vmem:[%s712_s3 + $0x18] sm:$0xff]  ;;  %v484_v12 = vpack.c.bf16 %v36_v7, %v35_v6  ;;  %v37_v14 = vld [vmem:[%s712_s3 + $0x40] sm:$0xff] }
   0x4   :  { %482 = vmatpush3.bf16.msra.mxu0 %v481_v4  ;;  %v496_v13 = vpack.c.bf16 %v31_v10, %v30_v9  ;;  %v38_v15 = vld [vmem:[%s712_s3 + $0x48] sm:$0xff]  ;;  %v190_v16 = vld [vmem:[%s712_s3 + $0x60] sm:$0xff] }
   0x5   :  { %494 = vmatpush3.bf16.msra.mxu1 %v493_v8  ;;  %483 = vmatprep.subr.bf16.mxu0 %v546_v3  ;;  %v191_v17 = vld [vmem:[%s712_s3 + $0x68] sm:$0xff] }
   0x6   :  { %495 = vmatprep.subr.bf16.mxu1 %v546_v3 }
   0x7   :  { %12 = vsyncpa [#allocation3], 0  ;;  %v487_v18 = vpack.c.bf16 %v38_v15, %v37_v14  ;;  %v27_v19 = vld [vmem:[%s709_s0] sm:$0x3]  ;;  %vm115_vm1 = vcmask 261120   ;;  %v499_v20 = vpack.c.bf16 %v191_v17, %v190_v16  ;;  %v39_v21 = vld [vmem:[%s712_s3 + $0x50] sm:$0xff]  ;;  %v365_v56 = vlaneseq }
   0x8   :  { %485 = vmatpush3.bf16.msra.mxu0 %v484_v12  ;;  %v40_v22 = vld [vmem:[%s712_s3 + $0x58] sm:$0xff]  ;;  %v192_v23 = vld [vmem:[%s712_s3 + $0x70] sm:$0xff]  ;;  %v32_v27 = vld [vmem:[%s710_s1] sm:$0x3]  ;;  %vm41_vm2 = vcmask 523264   ;;  %s549_s8 = smov [#allocation2]  }
   0x9   :  { %497 = vmatpush3.bf16.msra.mxu1 %v496_v13  ;;  %486 = vmatprep.subr.bf16.mxu0 %v546_v3  ;;  %v193_v24 = vld [vmem:[%s712_s3 + $0x78] sm:$0xff]  ;;  %v490_v25 = vpack.c.bf16 %v40_v22, %v39_v21  ;;  %v189_v28 = vld [vmem:[%s711_s2] sm:$0x3]  ;;  %v278_v30 = vld [vmem:[%s714_s5 + $0x8] sm:$0xff]  ;;  %v366_v57 = vand.u32 127, %v365_v56  ;;  %s378_s9 = sshll.u32 %s549_s8, 4  ;;  %s379_s9 = int_to_ptr.vmem [resolvable:$true] %s378_s9 }
   0xa   :  { %498 = vmatprep.subr.bf16.mxu1 %v546_v3  ;;  %v502_v26 = vpack.c.bf16 %v193_v24, %v192_v23  ;;  %v277_v29 = vld [vmem:[%s714_s5] sm:$0xff]  ;;  %v279_v32 = vld [vmem:[%s714_s5 + $0x10] sm:$0xff]  ;;  %v280_v33 = vld [vmem:[%s714_s5 + $0x18] sm:$0xff]  ;;  %vm370_vm4 = vcmask 123904   ;;  %p527_p1 = scmp.lt.s32.totalorder %s379_s9, %s379_s9 }
   0xb   :  { %v505_v31 = vpack.c.bf16 %v278_v30, %v277_v29  ;;  %v508_v34 = vpack.c.bf16 %v280_v33, %v279_v32  ;;  %v281_v35 = vld [vmem:[%s714_s5 + $0x20] sm:$0xff]  ;;  %v282_v36 = vld [vmem:[%s714_s5 + $0x28] sm:$0xff]  ;;  %v283_v38 = vld [vmem:[%s714_s5 + $0x30] sm:$0xff]  ;;  %vm367_vm3 = vcmp.lt.s32.totalorder %v366_v57, 8 }
   0xc   :  { %488 = vmatpush3.bf16.msra.mxu0 %v487_v18  ;;  %448 = vmatmul.mubr.msk.f32.vlgmr.msra.gmra.mrb[0].mxu1 %vm115_vm1, %v27_v19  ;;  %v511_v37 = vpack.c.bf16 %v282_v36, %v281_v35  ;;  %v284_v39 = vld [vmem:[%s714_s5 + $0x38] sm:$0xff]  ;;  %v389_v47 = vld [vmem:[%s713_s4] ss:$0 sm:$0xff]  ;;  %s522_s4 = scalar_lea.vmem %s379_s9, 32 }
   0xd   :  { %500 = vmatpush3.bf16.msra.mxu1 %v499_v20  ;;  %489 = vmatprep.subr.bf16.mxu0 %v546_v3  ;;  %v514_v40 = vpack.c.bf16 %v284_v39, %v283_v38  ;;  %v390_v52 = vld [vmem:[%s715_s6] ss:$0 sm:$0xff]  ;;  %p523_p0 = scmp.ne.s32.totalorder %s379_s9, %s522_s4  ;;  %p528_p2 = scmp.lt.s32.totalorder %s522_s4, %s522_s4 }
   0xe   :  { %501 = vmatprep.subr.bf16.mxu1 %v546_v3  ;;  %458 = vmatprep.mubr.msk.f32.mxu1 %vm547_vm0, %v548_v11 }
   0xf   :  { %p529_p3 = por %p528_p2, %p527_p1 }
  0x10   :  { %491 = vmatpush3.bf16.msra.mxu0 %v490_v25 }
  0x11   :  { %503 = vmatpush3.bf16.msra.mxu1 %v502_v26  ;;  %504 = vmatprep.subr.bf16.mxu0 %v546_v3  ;;  %p530_p4 = pnand %p529_p3, %p523_p0 }
  0x13   :  { %437 = vmatmul.mubr.msk.f32.vlgmr.msra.gmra.mrb[0].mxu0 %vm41_vm2, %v32_v27 }
  0x14   :  { %459 = vmatmul.mubr.msk.f32.vlgmr.msra.gmra.mrb[2].mxu1 %vm115_vm1, %v189_v28  ;;  %477 = vmatprep.mubr.msk.f32.mxu0 %vm547_vm0, %v548_v11 }
  0x15   :  { %506 = vmatpush3.bf16.msra.mxu0 %v505_v31 }
  0x16   :  { %507 = vmatprep.subr.bf16.mxu0 %v546_v3 }
  0x19   :  { %509 = vmatpush3.bf16.msra.mxu0 %v508_v34 }
  0x1a   :  { %510 = vmatprep.subr.bf16.mxu0 %v546_v3 }
  0x1d   :  { %512 = vmatpush3.bf16.msra.mxu0 %v511_v37 }
  0x1e   :  { %513 = vmatprep.subr.bf16.mxu0 %v546_v3 }
  0x21   :  { %515 = vmatpush3.bf16.msra.mxu0 %v514_v40 }
  0xdf   :  { %v185_v41 = vpop.f32.mrb[0].mxu1 }
  0xe0   :  { %v449_v42 = vpop.f32.mrb[1].mxu1 }
  0xe6   :  { %v111_v43 = vpop.f32.mrb[0].mxu0 }
  0xe7   :  { %v186_v44 = vadd.f32 %v185_v41, %v111_v43  ;;  %v438_v45 = vpop.f32.mrb[1].mxu0  ;;  %v263_v46 = vpop.f32.mrb[2].mxu1 }
  0xe8   :  { %v460_v48 = vpop.f32.mrb[3].mxu1 }
  0xe9   :  { %v267_v49 = vadd.f32 %v263_v46, %v186_v44 }
  0xeb   :  { %v275_v50 = vadd.f32 %v389_v47, %v267_v49 }
  0xed   :  { %v276_v51 = vmax.f32 %v275_v50, 0.0 }
  0xef   :  { %478 = vmatmul.mubr.msk.f32.vlgmr.msra.gmra.mrb[2].mxu0 %vm41_vm2, %v276_v51 }
 0x1c2   :  { %v361_v53 = vpop.f32.mrb[2].mxu0 }
 0x1c3   :  { %v362_v54 = vadd.f32 %v390_v52, %v361_v53  ;;  %v479_v55 = vpop.f32.mrb[3].mxu0 }
 0x1c5   :  { %520 = vtanh.f32 %v362_v54 }
 0x1cf   :  { %v521_v58 = vpop.eup %520 }
 0x1d0   :  { %v369_v59 = vsel %vm367_vm3, %v362_v54, %v521_v58 }
 0x1d1   :  { %371 = vst.msk [vmem:[#allocation2] sm:$0x3] %vm370_vm4, %v369_v59 }
 0x1d2   :  { %533 = shalt.err (!%p530_p4)
}
 0x1d3   :  { %s534_s11 = scalar_lea.hbm %s716_s7, 32 }
 0x1d4   :  { %p535_p5 = scmp.ne.s32.totalorder %s716_s7, %s534_s11  ;;  %p538_p6 = scmp.lt.u32.totalorder %s534_s11, %s716_s7 }
 0x1d6   :  { %p540_p7 = pnand %p538_p6, %p535_p5 }
 0x1d8   :  { %543 = shalt.err (!%p540_p7)
}
 0x1d9   :  { %381 = dma.vmem_to_hbm [thread:$0]  %s379_s9, 32, %s716_s7, [#allocation3]  }
 0x1da   :  { %544 = dma.done.wait [#allocation3], 32  }
 0x1db   :  { %545 = vsyncadd [#allocation3], 4294967264 }
 0x1dc   :  { %385 = vsyncpa [#allocation3], 1 }

// kernel: tpu_custom_call.1
= control target key start
LH: loop header
LB: loop body
LE: loop exit
PB: predicated region body
PF: predicated region fallthrough
CT: control target
= control target key end

     0   :  { %v546_v3 = vmov 0.0|0.0   ;;  %vm547_vm0 = vmmov 0   ;;  %v548_v11 = vmov 0.0   ;;  %s709_s0 = inlined_call_operand.vmem [shape: f32[2,32], index: 0, kind: input, shape index: {}]   ;;  %s710_s1 = inlined_call_operand.vmem [shape: f32[2,64], index: 1, kind: input, shape index: {}]   ;;  %s711_s2 = inlined_call_operand.vmem [shape: f32[2,32], index: 2, kind: input, shape index: {}]   ;;  %s712_s3 = inlined_call_operand.vmem [shape: f32[128,64], index: 3, kind: input, shape index: {}]   ;;  %s713_s4 = inlined_call_operand.vmem [shape: f32[1,64], index: 4, kind: input, shape index: {}]   ;;  %s714_s5 = inlined_call_operand.vmem [shape: f32[64,16], index: 5, kind: input, shape index: {}]   ;;  %s715_s6 = inlined_call_operand.vmem [shape: f32[1,16], index: 6, kind: input, shape index: {}]   ;;  %s716_s7 = inlined_call_operand.hbm [shape: f32[2,16], index: 7, kind: output, shape index: {}]  }
   0x1   :  { %v33_v0 = vld [vmem:[%s712_s3 + $0x20] sm:$0xff]  ;;  %v34_v1 = vld [vmem:[%s712_s3 + $0x28] sm:$0xff]  ;;  %480 = vmatprep.subr.bf16.mxu0 %v546_v3  ;;  %492 = vmatprep.subr.bf16.mxu1 %v546_v3  ;;  %v35_v6 = vld [vmem:[%s712_s3 + $0x30] sm:$0xff] }
   0x2   :  { %v28_v2 = vld [vmem:[%s712_s3] sm:$0xff]  ;;  %v481_v4 = vpack.c.bf16 %v34_v1, %v33_v0  ;;  %v29_v5 = vld [vmem:[%s712_s3 + $0x8] sm:$0xff]  ;;  %v36_v7 = vld [vmem:[%s712_s3 + $0x38] sm:$0xff]  ;;  %447 = vmatprep.mubr.msk.f32.mxu1 %vm547_vm0, %v548_v11  ;;  %436 = vmatprep.mubr.msk.f32.mxu0 %vm547_vm0, %v548_v11 }
   0x3   :  { %v493_v8 = vpack.c.bf16 %v29_v5, %v28_v2  ;;  %v30_v9 = vld [vmem:[%s712_s3 + $0x10] sm:$0xff]  ;;  %v31_v10 = vld [vmem:[%s712_s3 + $0x18] sm:$0xff]  ;;  %v484_v12 = vpack.c.bf16 %v36_v7, %v35_v6  ;;  %v37_v14 = vld [vmem:[%s712_s3 + $0x40] sm:$0xff] }
   0x4   :  { %482 = vmatpush3.bf16.msra.mxu0 %v481_v4  ;;  %v496_v13 = vpack.c.bf16 %v31_v10, %v30_v9  ;;  %v38_v15 = vld [vmem:[%s712_s3 + $0x48] sm:$0xff]  ;;  %v190_v16 = vld [vmem:[%s712_s3 + $0x60] sm:$0xff] }
   0x5   :  { %494 = vmatpush3.bf16.msra.mxu1 %v493_v8  ;;  %483 = vmatprep.subr.bf16.mxu0 %v546_v3  ;;  %v191_v17 = vld [vmem:[%s712_s3 + $0x68] sm:$0xff] }
   0x6   :  { %495 = vmatprep.subr.bf16.mxu1 %v546_v3 }
   0x7   :  { %12 = vsyncpa [#allocation3], 0  ;;  %v487_v18 = vpack.c.bf16 %v38_v15, %v37_v14  ;;  %v27_v19 = vld [vmem:[%s709_s0] sm:$0x3]  ;;  %vm115_vm1 = vcmask 261120   ;;  %v499_v20 = vpack.c.bf16 %v191_v17, %v190_v16  ;;  %v39_v21 = vld [vmem:[%s712_s3 + $0x50] sm:$0xff]  ;;  %v365_v56 = vlaneseq }
   0x8   :  { %485 = vmatpush3.bf16.msra.mxu0 %v484_v12  ;;  %v40_v22 = vld [vmem:[%s712_s3 + $0x58] sm:$0xff]  ;;  %v192_v23 = vld [vmem:[%s712_s3 + $0x70] sm:$0xff]  ;;  %v32_v27 = vld [vmem:[%s710_s1] sm:$0x3]  ;;  %vm41_vm2 = vcmask 523264   ;;  %s549_s8 = smov [#allocation2]  }
   0x9   :  { %497 = vmatpush3.bf16.msra.mxu1 %v496_v13  ;;  %486 = vmatprep.subr.bf16.mxu0 %v546_v3  ;;  %v193_v24 = vld [vmem:[%s712_s3 + $0x78] sm:$0xff]  ;;  %v490_v25 = vpack.c.bf16 %v40_v22, %v39_v21  ;;  %v189_v28 = vld [vmem:[%s711_s2] sm:$0x3]  ;;  %v278_v30 = vld [vmem:[%s714_s5 + $0x8] sm:$0xff]  ;;  %v366_v57 = vand.u32 127, %v365_v56  ;;  %s378_s9 = sshll.u32 %s549_s8, 4  ;;  %s379_s9 = int_to_ptr.vmem [resolvable:$true] %s378_s9 }
   0xa   :  { %498 = vmatprep.subr.bf16.mxu1 %v546_v3  ;;  %v502_v26 = vpack.c.bf16 %v193_v24, %v192_v23  ;;  %v277_v29 = vld [vmem:[%s714_s5] sm:$0xff]  ;;  %v279_v32 = vld [vmem:[%s714_s5 + $0x10] sm:$0xff]  ;;  %v280_v33 = vld [vmem:[%s714_s5 + $0x18] sm:$0xff]  ;;  %vm370_vm4 = vcmask 123904   ;;  %p527_p1 = scmp.lt.s32.totalorder %s379_s9, %s379_s9 }
   0xb   :  { %v505_v31 = vpack.c.bf16 %v278_v30, %v277_v29  ;;  %v508_v34 = vpack.c.bf16 %v280_v33, %v279_v32  ;;  %v281_v35 = vld [vmem:[%s714_s5 + $0x20] sm:$0xff]  ;;  %v282_v36 = vld [vmem:[%s714_s5 + $0x28] sm:$0xff]  ;;  %v283_v38 = vld [vmem:[%s714_s5 + $0x30] sm:$0xff]  ;;  %vm367_vm3 = vcmp.lt.s32.totalorder %v366_v57, 8 }
   0xc   :  { %488 = vmatpush3.bf16.msra.mxu0 %v487_v18  ;;  %448 = vmatmul.mubr.msk.f32.vlgmr.msra.gmra.mrb[0].mxu1 %vm115_vm1, %v27_v19  ;;  %v511_v37 = vpack.c.bf16 %v282_v36, %v281_v35  ;;  %v284_v39 = vld [vmem:[%s714_s5 + $0x38] sm:$0xff]  ;;  %v389_v47 = vld [vmem:[%s713_s4] ss:$0 sm:$0xff]  ;;  %s522_s4 = scalar_lea.vmem %s379_s9, 32 }
   0xd   :  { %500 = vmatpush3.bf16.msra.mxu1 %v499_v20  ;;  %489 = vmatprep.subr.bf16.mxu0 %v546_v3  ;;  %v514_v40 = vpack.c.bf16 %v284_v39, %v283_v38  ;;  %v390_v52 = vld [vmem:[%s715_s6] ss:$0 sm:$0xff]  ;;  %p523_p0 = scmp.ne.s32.totalorder %s379_s9, %s522_s4  ;;  %p528_p2 = scmp.lt.s32.totalorder %s522_s4, %s522_s4 }
   0xe   :  { %501 = vmatprep.subr.bf16.mxu1 %v546_v3  ;;  %458 = vmatprep.mubr.msk.f32.mxu1 %vm547_vm0, %v548_v11 }
   0xf   :  { %p529_p3 = por %p528_p2, %p527_p1 }
  0x10   :  { %491 = vmatpush3.bf16.msra.mxu0 %v490_v25 }
  0x11   :  { %503 = vmatpush3.bf16.msra.mxu1 %v502_v26  ;;  %504 = vmatprep.subr.bf16.mxu0 %v546_v3  ;;  %p530_p4 = pnand %p529_p3, %p523_p0 }
  0x13   :  { %437 = vmatmul.mubr.msk.f32.vlgmr.msra.gmra.mrb[0].mxu0 %vm41_vm2, %v32_v27 }
  0x14   :  { %459 = vmatmul.mubr.msk.f32.vlgmr.msra.gmra.mrb[2].mxu1 %vm115_vm1, %v189_v28  ;;  %477 = vmatprep.mubr.msk.f32.mxu0 %vm547_vm0, %v548_v11 }
  0x15   :  { %506 = vmatpush3.bf16.msra.mxu0 %v505_v31 }
  0x16   :  { %507 = vmatprep.subr.bf16.mxu0 %v546_v3 }
  0x19   :  { %509 = vmatpush3.bf16.msra.mxu0 %v508_v34 }
  0x1a   :  { %510 = vmatprep.subr.bf16.mxu0 %v546_v3 }
  0x1d   :  { %512 = vmatpush3.bf16.msra.mxu0 %v511_v37 }
  0x1e   :  { %513 = vmatprep.subr.bf16.mxu0 %v546_v3 }
  0x21   :  { %515 = vmatpush3.bf16.msra.mxu0 %v514_v40 }
  0xdf   :  { %v185_v41 = vpop.f32.mrb[0].mxu1 }
  0xe0   :  { %v449_v42 = vpop.f32.mrb[1].mxu1 }
  0xe6   :  { %v111_v43 = vpop.f32.mrb[0].mxu0 }
  0xe7   :  { %v186_v44 = vadd.f32 %v185_v41, %v111_v43  ;;  %v438_v45 = vpop.f32.mrb[1].mxu0  ;;  %v263_v46 = vpop.f32.mrb[2].mxu1 }
  0xe8   :  { %v460_v48 = vpop.f32.mrb[3].mxu1 }
  0xe9   :  { %v267_v49 = vadd.f32 %v263_v46, %v186_v44 }
  0xeb   :  { %v275_v50 = vadd.f32 %v389_v47, %v267_v49 }
  0xed   :  { %v276_v51 = vmax.f32 %v275_v50, 0.0 }
  0xef   :  { %478 = vmatmul.mubr.msk.f32.vlgmr.msra.gmra.mrb[2].mxu0 %vm41_vm2, %v276_v51 }
 0x1c2   :  { %v361_v53 = vpop.f32.mrb[2].mxu0 }
 0x1c3   :  { %v362_v54 = vadd.f32 %v390_v52, %v361_v53  ;;  %v479_v55 = vpop.f32.mrb[3].mxu0 }
 0x1c5   :  { %520 = vtanh.f32 %v362_v54 }
 0x1cf   :  { %v521_v58 = vpop.eup %520 }
 0x1d0   :  { %v369_v59 = vsel %vm367_vm3, %v362_v54, %v521_v58 }
 0x1d1   :  { %371 = vst.msk [vmem:[#allocation2] sm:$0x3] %vm370_vm4, %v369_v59 }
 0x1d2   :  { %533 = shalt.err (!%p530_p4)
}
 0x1d3   :  { %s534_s11 = scalar_lea.hbm %s716_s7, 32 }
 0x1d4   :  { %p535_p5 = scmp.ne.s32.totalorder %s716_s7, %s534_s11  ;;  %p538_p6 = scmp.lt.u32.totalorder %s534_s11, %s716_s7 }
 0x1d6   :  { %p540_p7 = pnand %p538_p6, %p535_p5 }
 0x1d8   :  { %543 = shalt.err (!%p540_p7)
}
 0x1d9   :  { %381 = dma.vmem_to_hbm [thread:$0]  %s379_s9, 32, %s716_s7, [#allocation3]  }
 0x1da   :  { %544 = dma.done.wait [#allocation3], 32  }
 0x1db   :  { %545 = vsyncadd [#allocation3], 4294967264 }
 0x1dc   :  { %385 = vsyncpa [#allocation3], 1 }

</bundles_post_ra>
